<compile_context>
chip_gen: v7x
topology: tpu7x:2x2x1
jax: 0.10.0
libtpu: 0.0.40
codegen_flags: <defaults>
</compile_context>

<pallas_src>
import jax
import jax.numpy as jnp
from jax.experimental import pallas as pl
from jax.experimental.pallas import tpu as pltpu


def _self_attn_kernel(x_ref, wt_ref, b_ref, out_ref, attn_ref, q_bf_ref):
    # x_ref:    (BT, L, E)  full-sequence input rows for this batch tile
    # wt_ref:   (E, E)      projection weight, pre-transposed (in, out)
    # b_ref:    (1, E)      projection bias
    # out_ref:  (BT, TQ, E) attention-output tile
    # attn_ref: (BT, TQ, L) attention-weights tile
    # q_bf_ref: (BT, L, E)  bf16 scratch holding the shared projection q=k=v
    qi = pl.program_id(1)
    tq = out_ref.shape[1]

    # Shared projection, done once per batch tile (first query tile only),
    # then kept resident in VMEM for every query tile of this batch tile.
    @pl.when(qi == 0)
    def _project():
        q = jnp.einsum(
            "ble,eo->blo", x_ref[...], wt_ref[...],
            preferred_element_type=jnp.float32,
        ) + b_ref[...]
        q_bf_ref[...] = q.astype(jnp.bfloat16)

    kv = q_bf_ref[...]                                    # (BT, L, E) bf16
    if q_bf_ref.shape[1] == tq:                           # single query tile
        q_tile = kv
    else:
        start = pl.multiple_of(qi * tq, tq)
        q_tile = q_bf_ref[:, pl.ds(start, tq), :]         # (BT, TQ, E) bf16

    # Unscaled scores (scaled=False): bf16 MXU operands, f32 accumulation.
    # Contraction on the last dim of both operands -> no explicit transpose.
    s = jnp.einsum("bqd,bkd->bqk", q_tile, kv,
                   preferred_element_type=jnp.float32)    # (BT, TQ, L) f32

    # Softmax over the source axis (dim=2 in the torch module), all f32.
    m = jnp.max(s, axis=-1, keepdims=True)
    e = jnp.exp(s - m)
    denom = jnp.sum(e, axis=-1, keepdims=True)
    attn = e * pl.reciprocal(denom, approx=True)          # (BT, TQ, L) f32

    # Output = attn @ v (v == q): bf16 MXU operands, f32 accumulation.
    out = jnp.einsum("bqk,bkd->bqd", attn.astype(jnp.bfloat16), kv,
                     preferred_element_type=jnp.float32)  # (BT, TQ, E)

    out_ref[...] = out.astype(out_ref.dtype)
    attn_ref[...] = attn.astype(attn_ref.dtype)


def _pick_tiles(N, L, E):
    # Query tile: full sequence when small, else the largest 128-aligned
    # divisor of L so every live block stays comfortably inside VMEM.
    tq = L
    if L > 512:
        for cand in (512, 256, 128, 64, 32, 16, 8):
            if L % cand == 0:
                tq = cand
                break
    # Batch tile: fold several batch rows into one grid step for small
    # problems to amortize per-grid-step overhead and fill MXU/lanes.
    per_row = (L * L + 3 * L * E) * 4  # rough f32 bytes of live data per row
    bt = 1
    for cand in range(min(N, 8), 0, -1):
        if N % cand == 0 and cand * per_row <= 4 * 1024 * 1024:
            bt = cand
            break
    return bt, tq


def self_attention(x, weight, bias):
    """x: (N, L, E) f32; weight: (E, E) PyTorch (out, in) layout; bias: (E,)."""
    N, L, E = x.shape
    wt = weight.T                      # (E_in, E_out): kernel does x @ wt + b
    b2 = bias.reshape(1, E)

    bt, tq = _pick_tiles(N, L, E)
    grid = (N // bt, L // tq)

    # Double-buffered block footprint + persistent scratch -> VMEM cap
    # (cap at 56 MiB: headroom below v7x's 64 MiB physical VMEM).
    fp = (2 * bt * L * E * 4            # x blocks
          + 2 * E * E * 4 + 2 * E * 4   # weight / bias blocks
          + 2 * bt * tq * E * 4         # out blocks
          + 2 * bt * tq * L * 4         # attn blocks
          + bt * L * E * 2)             # bf16 projection scratch
    vmem_limit = int(min(max(fp + (8 << 20), 32 << 20), 56 << 20))

    out_shapes = (
        jax.ShapeDtypeStruct((N, L, E), jnp.float32),  # attn_output
        jax.ShapeDtypeStruct((N, L, L), jnp.float32),  # attn_output_weights
    )

    return pl.pallas_call(
        _self_attn_kernel,
        out_shape=out_shapes,
        grid=grid,
        in_specs=[
            pl.BlockSpec((bt, L, E), lambda b, q: (b, 0, 0)),  # x (full seq)
            pl.BlockSpec((E, E), lambda b, q: (0, 0)),         # weight^T
            pl.BlockSpec((1, E), lambda b, q: (0, 0)),         # bias
        ],
        out_specs=(
            pl.BlockSpec((bt, tq, E), lambda b, q: (b, q, 0)),
            pl.BlockSpec((bt, tq, L), lambda b, q: (b, q, 0)),
        ),
        scratch_shapes=[pltpu.VMEM((bt, L, E), jnp.bfloat16)],
        compiler_params=pltpu.CompilerParams(
            dimension_semantics=("parallel", "arbitrary"),
            vmem_limit_bytes=vmem_limit,
        ),
    )(x, wt, b2)


def _reference(x, weight, bias):
    # plain-JAX f32 reference of the PyTorch forward
    q = jnp.einsum("nle,oe->nlo", x, weight) + bias
    a = jnp.einsum("nle,nse->nls", q, q)
    attn = jax.nn.softmax(a, axis=-1)
    out = jnp.einsum("nls,nse->nle", attn, q)
    return out, attn


if __name__ == "__main__":
    # Small shapes consistent with the module: batch=2, seq=8, qdim=32
    N, L, E = 2, 8, 32
    key = jax.random.PRNGKey(0)
    kx, kw, kb = jax.random.split(key, 3)

    x = jax.random.normal(kx, (N, L, E), dtype=jnp.float32)

    # Deterministic parameter init mimicking nn.Linear defaults
    # (uniform(-1/sqrt(fan_in), 1/sqrt(fan_in))).
    bound = 1.0 / (E ** 0.5)
    weight = jax.random.uniform(kw, (E, E), jnp.float32, -bound, bound)  # (out, in)
    bias = jax.random.uniform(kb, (E,), jnp.float32, -bound, bound)

    out, attn = self_attention(x, weight, bias)
    out, attn = jax.block_until_ready((out, attn))

    ref_out, ref_attn = _reference(x, weight, bias)
    # bf16 MXU operands + approx reciprocal loosen the tolerance vs. the f32
    # reference (per the perf review); softmax/accumulation remain f32.
    assert jnp.allclose(out, ref_out, atol=5e-2, rtol=5e-2), "output mismatch"
    assert jnp.allclose(attn, ref_attn, atol=5e-2, rtol=5e-2), "attn weights mismatch"
    assert out.shape == (N, L, E) and attn.shape == (N, L, L)
    # sanity: softmax rows sum to 1
    assert jnp.allclose(attn.sum(-1), 1.0, atol=1e-2), "softmax rows not normalized"

    print("KERNEL_OK")
</pallas_src>

<mosaic_0001>
module attributes {stable_mosaic.version = 11 : i64} {
  func.func @_self_attn_kernel(%arg0: i32, %arg1: i32, %arg2: memref<2x8x32xf32, #tpu.memory_space<vmem>>, %arg3: memref<32x32xf32, #tpu.memory_space<vmem>>, %arg4: memref<1x32xf32, #tpu.memory_space<vmem>>, %arg5: memref<2x8x32xf32, #tpu.memory_space<vmem>>, %arg6: memref<2x8x8xf32, #tpu.memory_space<vmem>>, %arg7: memref<2x8x32xbf16, #tpu.memory_space<vmem>>) attributes {dimension_semantics = [#tpu.dimension_semantics<parallel>, #tpu.dimension_semantics<arbitrary>], iteration_bounds = array<i64: 1, 1>, scalar_prefetch = 0 : i64, scratch_operands = 1 : i64, tpu.core_type = #tpu.core_type<tc>, window_params = [{transform_indices = @transform_0, window_bounds = array<i64: 2, 8, 32>}, {pipeline_mode = #tpu.pipeline_mode<synchronous>, transform_indices = @transform_1, window_bounds = array<i64: 32, 32>}, {pipeline_mode = #tpu.pipeline_mode<synchronous>, transform_indices = @transform_2, window_bounds = array<i64: 1, 32>}, {transform_indices = @transform_3, window_bounds = array<i64: 2, 8, 32>}, {transform_indices = @transform_4, window_bounds = array<i64: 2, 8, 8>}]} {
    %c0_i32 = arith.constant 0 : i32
    %0 = arith.cmpi eq, %arg1, %c0_i32 : i32
    %1 = arith.extui %0 : i1 to i32
    %c0_i32_0 = arith.constant 0 : i32
    %2 = arith.cmpi ne, %1, %c0_i32_0 : i32
    scf.if %2 {
      %c0_12 = arith.constant 0 : index
      %c0_13 = arith.constant 0 : index
      %c0_14 = arith.constant 0 : index
      %19 = vector.load %arg2[%c0_12, %c0_13, %c0_14] : memref<2x8x32xf32, #tpu.memory_space<vmem>>, vector<2x8x32xf32>
      %c0_15 = arith.constant 0 : index
      %c0_16 = arith.constant 0 : index
      %20 = vector.load %arg3[%c0_15, %c0_16] : memref<32x32xf32, #tpu.memory_space<vmem>>, vector<32x32xf32>
      "tpu.trace_start"() <{level = 10 : i32, message = "ble,eo->blo"}> : () -> ()
      %cst_17 = arith.constant dense<0.000000e+00> : vector<2x8x32xf32>
      %21 = tpu.matmul %19, %20, %cst_17 {dimension_numbers = #tpu.dot_dimension_numbers<[2], [0], [0, 1], [1], [0, 0, 0, 1, 1, 1], [], []>} : vector<2x8x32xf32>, vector<32x32xf32>, vector<2x8x32xf32> -> vector<2x8x32xf32>
      "tpu.trace_stop"() : () -> ()
      %c0_18 = arith.constant 0 : index
      %c0_19 = arith.constant 0 : index
      %22 = vector.load %arg4[%c0_18, %c0_19] : memref<1x32xf32, #tpu.memory_space<vmem>>, vector<1x32xf32>
      %23 = vector.shape_cast %22 : vector<1x32xf32> to vector<1x1x32xf32>
      %24 = vector.broadcast %23 : vector<1x1x32xf32> to vector<2x8x32xf32>
      %25 = arith.addf %21, %24 : vector<2x8x32xf32>
      %26 = arith.truncf %25 : vector<2x8x32xf32> to vector<2x8x32xbf16>
      %c0_20 = arith.constant 0 : index
      %c0_21 = arith.constant 0 : index
      %c0_22 = arith.constant 0 : index
      %27 = vector.load %arg7[%c0_20, %c0_21, %c0_22] : memref<2x8x32xbf16, #tpu.memory_space<vmem>>, vector<2x8x32xbf16>
      tpu.vector_store %arg7[%c0_20, %c0_21, %c0_22], %26 {strides = array<i32>} : memref<2x8x32xbf16, #tpu.memory_space<vmem>>, vector<2x8x32xbf16>,
    } else {
    }
    %c0 = arith.constant 0 : index
    %c0_1 = arith.constant 0 : index
    %c0_2 = arith.constant 0 : index
    %3 = vector.load %arg7[%c0, %c0_1, %c0_2] : memref<2x8x32xbf16, #tpu.memory_space<vmem>>, vector<2x8x32xbf16>
    "tpu.trace_start"() <{level = 10 : i32, message = "bqd,bkd->bqk"}> : () -> ()
    %cst = arith.constant dense<0.000000e+00> : vector<2x8x8xf32>
    %4 = tpu.matmul %3, %3, %cst {dimension_numbers = #tpu.dot_dimension_numbers<[2], [2], [1], [1], [0, 0, 0, 1, 1, 1], [0], [0]>} : vector<2x8x32xbf16>, vector<2x8x32xbf16>, vector<2x8x8xf32> -> vector<2x8x8xf32>
    "tpu.trace_stop"() : () -> ()
    %cst_3 = arith.constant dense<0xFF800000> : vector<2x8xf32>
    %5 = vector.multi_reduction <maximumf>, %4, %cst_3 [2] : vector<2x8x8xf32> to vector<2x8xf32>
    %6 = vector.shape_cast %5 : vector<2x8xf32> to vector<2x8x1xf32>
    %7 = vector.broadcast %6 : vector<2x8x1xf32> to vector<2x8x8xf32>
    %8 = arith.subf %4, %7 : vector<2x8x8xf32>
    %9 = math.exp %8 : vector<2x8x8xf32>
    %cst_4 = arith.constant dense<0.000000e+00> : vector<2x8xf32>
    %10 = vector.multi_reduction <add>, %9, %cst_4 [2] : vector<2x8x8xf32> to vector<2x8xf32>
    %11 = vector.shape_cast %10 : vector<2x8xf32> to vector<2x8x1xf32>
    %12 = tpu.reciprocal %11 {approx = true} : vector<2x8x1xf32> -> vector<2x8x1xf32>
    %13 = vector.broadcast %12 : vector<2x8x1xf32> to vector<2x8x8xf32>
    %14 = arith.mulf %9, %13 : vector<2x8x8xf32>
    %15 = arith.truncf %14 : vector<2x8x8xf32> to vector<2x8x8xbf16>
    "tpu.trace_start"() <{level = 10 : i32, message = "bqk,bkd->bqd"}> : () -> ()
    %cst_5 = arith.constant dense<0.000000e+00> : vector<2x8x32xf32>
    %16 = tpu.matmul %15, %3, %cst_5 {dimension_numbers = #tpu.dot_dimension_numbers<[2], [1], [1], [2], [0, 0, 0, 1, 1, 2], [0], [0]>} : vector<2x8x8xbf16>, vector<2x8x32xbf16>, vector<2x8x32xf32> -> vector<2x8x32xf32>
    "tpu.trace_stop"() : () -> ()
    %c0_6 = arith.constant 0 : index
    %c0_7 = arith.constant 0 : index
    %c0_8 = arith.constant 0 : index
    %17 = vector.load %arg5[%c0_6, %c0_7, %c0_8] : memref<2x8x32xf32, #tpu.memory_space<vmem>>, vector<2x8x32xf32>
    tpu.vector_store %arg5[%c0_6, %c0_7, %c0_8], %16 {strides = array<i32>} : memref<2x8x32xf32, #tpu.memory_space<vmem>>, vector<2x8x32xf32>,
    %c0_9 = arith.constant 0 : index
    %c0_10 = arith.constant 0 : index
    %c0_11 = arith.constant 0 : index
    %18 = vector.load %arg6[%c0_9, %c0_10, %c0_11] : memref<2x8x8xf32, #tpu.memory_space<vmem>>, vector<2x8x8xf32>
    tpu.vector_store %arg6[%c0_9, %c0_10, %c0_11], %14 {strides = array<i32>} : memref<2x8x8xf32, #tpu.memory_space<vmem>>, vector<2x8x8xf32>,
    return
  }
  func.func @transform_0(%arg0: i32, %arg1: i32) -> (i32, i32, i32) {
    %c0_i32 = arith.constant 0 : i32
    %c0_i32_0 = arith.constant 0 : i32
    %c0_i32_1 = arith.constant 0 : i32
    return %arg0, %c0_i32, %c0_i32_0 : i32, i32, i32
  }
  func.func @transform_1(%arg0: i32, %arg1: i32) -> (i32, i32) {
    %c0_i32 = arith.constant 0 : i32
    %c0_i32_0 = arith.constant 0 : i32
    %c0_i32_1 = arith.constant 0 : i32
    return %c0_i32, %c0_i32_0 : i32, i32
  }
  func.func @transform_2(%arg0: i32, %arg1: i32) -> (i32, i32) {
    %c0_i32 = arith.constant 0 : i32
    %c0_i32_0 = arith.constant 0 : i32
    %c0_i32_1 = arith.constant 0 : i32
    return %c0_i32, %c0_i32_0 : i32, i32
  }
  func.func @transform_3(%arg0: i32, %arg1: i32) -> (i32, i32, i32) {
    %c0_i32 = arith.constant 0 : i32
    %c0_i32_0 = arith.constant 0 : i32
    return %arg0, %arg1, %c0_i32 : i32, i32, i32
  }
  func.func @transform_4(%arg0: i32, %arg1: i32) -> (i32, i32, i32) {
    %c0_i32 = arith.constant 0 : i32
    %c0_i32_0 = arith.constant 0 : i32
    return %arg0, %arg1, %c0_i32 : i32, i32, i32
  }
}

</mosaic_0001>

<bundles_post_ra>
// kernel: tpu_custom_call.1
= control target key start
LH: loop header
LB: loop body
LE: loop exit
PB: predicated region body
PF: predicated region fallthrough
CT: control target
= control target key end

     0   :  { %10 = vsyncpa [#allocation4], 0  ;;  %s686_s0 = inlined_call_operand.hbm [shape: f32[2,8,32], index: 0, kind: input, shape index: {}]   ;;  %s687_s1 = inlined_call_operand.hbm [shape: f32[32,32], index: 1, kind: input, shape index: {}]   ;;  %s688_s2 = inlined_call_operand.vmem [shape: f32[1,32], index: 2, kind: input, shape index: {}]   ;;  %s689_s3 = inlined_call_operand.hbm [shape: f32[2,8,32], index: 3, kind: output, shape index: {0}]   ;;  %s690_s4 = inlined_call_operand.hbm [shape: f32[2,8,8], index: 4, kind: output, shape index: {1}]  }
   0x1   :  { %11 = vsyncpa [#allocation7], 0 }
   0x2   :  { %12 = vsyncpa [#allocation5], 0 }
   0x3   :  { %13 = vsyncpa [#allocation10], 0  ;;  %s570_s15 = smov [#allocation3]   ;;  %s474_s19 = scalar_lea.hbm %s686_s0, 256 }
   0x4   :  { %s19_s16 = sshll.u32 %s570_s15, 4  ;;  %p475_p0 = scmp.ne.s32.totalorder %s686_s0, %s474_s19  ;;  %s20_s16 = int_to_ptr.vmem [resolvable:$true] %s19_s16 }
   0x5   :  { %p478_p1 = scmp.lt.u32.totalorder %s474_s19, %s686_s0 }
   0x7   :  { %p480_p2 = pnand %p478_p1, %p475_p0 }
   0x9   :  { %483 = shalt.err (!%p480_p2)
}
   0xa   :  { %s484_s24 = scalar_lea.vmem %s20_s16, 256  ;;  %p489_p4 = scmp.lt.s32.totalorder %s20_s16, %s20_s16 }
   0xb   :  { %p485_p3 = scmp.ne.s32.totalorder %s20_s16, %s484_s24  ;;  %p490_p5 = scmp.lt.s32.totalorder %s484_s24, %s484_s24 }
   0xd   :  { %p491_p6 = por %p490_p5, %p489_p4 }
   0xf   :  { %p492_p7 = pnand %p491_p6, %p485_p3 }
  0x11   :  { %495 = shalt.err (!%p492_p7)
}
  0x12   :  { %s571_s25 = smov 128   ;;  %s572_s26 = smov 8  }
  0x13   :  { %25 = dma.hbm_to_vmem [thread:$0]  %s686_s0, 256, %s20_s16, [#allocation4], %s571_s25, %s571_s25, %s572_s26  }
  0x14   :  { %s573_s29 = smov [#allocation6]   ;;  %s496_s7 = scalar_lea.hbm %s687_s1, 512 }
  0x15   :  { %s31_s30 = sshll.u32 %s573_s29, 4  ;;  %p497_p8 = scmp.ne.s32.totalorder %s687_s1, %s496_s7  ;;  %s32_s30 = int_to_ptr.vmem [resolvable:$true] %s31_s30 }
  0x16   :  { %p500_p9 = scmp.lt.u32.totalorder %s496_s7, %s687_s1 }
  0x18   :  { %p502_p10 = pnand %p500_p9, %p497_p8 }
  0x1a   :  { %505 = shalt.err (!%p502_p10)
}
  0x1b   :  { %s506_s12 = scalar_lea.vmem %s32_s30, 512  ;;  %p511_p12 = scmp.lt.s32.totalorder %s32_s30, %s32_s30 }
  0x1c   :  { %p507_p11 = scmp.ne.s32.totalorder %s32_s30, %s506_s12  ;;  %p512_p13 = scmp.lt.s32.totalorder %s506_s12, %s506_s12 }
  0x1e   :  { %p513_p0 = por %p512_p13, %p511_p12 }
  0x20   :  { %p514_p1 = pnand %p513_p0, %p507_p11 }
  0x22   :  { %517 = shalt.err (!%p514_p1)
}
  0x23   :  { %37 = dma.hbm_to_vmem [thread:$0]  %s687_s1, 512, %s32_s30, [#allocation7], %s571_s25, %s571_s25, %s572_s26  }
  0x24   :  { %562 = dma.done.wait [#allocation4], 256  }
  0x25   :  { %563 = vsyncadd [#allocation4], 4294967040 }
  0x26   :  { %564 = dma.done.wait [#allocation7], 512  }
  0x27   :  { %565 = vsyncadd [#allocation7], 4294966784  ;;  %vm64_vm0 = vcmask 261120   ;;  %v53_v0 = vld [vmem:[#allocation6] sm:$0xff]  ;;  %v54_v1 = vld [vmem:[#allocation6 + $0x8] sm:$0xff]  ;;  %v574_v8 = vmov 0.0  }
  0x28   :  { %v55_v2 = vld [vmem:[#allocation6 + $0x10] sm:$0xff]  ;;  %v450_v3 = vpack.c.bf16 %v54_v1, %v53_v0  ;;  %v56_v4 = vld [vmem:[#allocation6 + $0x18] sm:$0xff]  ;;  %426 = vmatprep.subr.bf16.mxu1 %v574_v8  ;;  %vm575_vm1 = vmmov 0   ;;  %v394_v9 = vld [vmem:[%s688_s2] ss:$0 sm:$0xff]  ;;  %vm148_vm2 = vcmask 257024  }
  0x29   :  { %v51_v5 = vld [vmem:[#allocation3] sm:$0xff]  ;;  %v454_v6 = vpack.c.bf16 %v56_v4, %v55_v2  ;;  %v52_v7 = vld [vmem:[#allocation3 + $0x8] sm:$0xff]  ;;  %428 = vmatprep.mubr.msk.bf16.mxu1 %vm575_vm1, %v574_v8  ;;  %vm268_vm3 = vcmask 1043456   ;;  %vm240_vm4 = vcmask 64512   ;;  %s576_s2 = smov [#allocation9]  }
  0x2a   :  { %423 = vmatprep.mubr.msk.f32.mxu0 %vm64_vm0, %v51_v5  ;;  %451 = vmatprep.subr.bf16.mxu0 %v450_v3  ;;  %s377_s15 = sshll.u32 %s576_s2, 4  ;;  %s378_s15 = int_to_ptr.vmem [resolvable:$true] %s377_s15 }
  0x2b   :  { %453 = vmatpush3.bf16.msra.mxu0 %v450_v3  ;;  %s518_s16 = scalar_lea.vmem %s378_s15, 256  ;;  %p523_p3 = scmp.lt.s32.totalorder %s378_s15, %s378_s15 }
  0x2c   :  { %455 = vmatprep.subr.bf16.mxu0 %v454_v6  ;;  %p519_p2 = scmp.ne.s32.totalorder %s378_s15, %s518_s16  ;;  %p524_p4 = scmp.lt.s32.totalorder %s518_s16, %s518_s16 }
  0x2e   :  { %p525_p5 = por %p524_p4, %p523_p3 }
  0x2f   :  { %457 = vmatpush3.bf16.msra.mxu0 %v454_v6 }
  0x30   :  { %432 = vmatprep.subr.bf16.mxu0 %v574_v8  ;;  %p526_p6 = pnand %p525_p5, %p519_p2 }
  0x32   :  { %424 = vmatmul.mubr.msk.f32.vlgmr.msra.gmra.mrb[0].mxu0 %vm64_vm0, %v52_v7 }
  0x33   :  { %434 = vmatprep.mubr.msk.bf16.mxu0 %vm575_vm1, %v574_v8 }
 0x105   :  { %v425_v10 = vpop.f32.mrb[0].mxu0 }
 0x106   :  { %v143_v11 = vadd.f32 %v425_v10, %v394_v9  ;;  %v137_v12 = vpop.f32.mrb[1].mxu0 }
 0x107   :  { %v138_v13 = vadd.f32 %v394_v9, %v137_v12 }
 0x108   :  { %v147_v14 = vpack.c.bf16 %v143_v11, %v143_v11 }
 0x109   :  { %v146_v15 = vpack.c.bf16 %v138_v13, %v138_v13 }
 0x10a   :  { %150 = vst.msk [vmem:[#allocation2 + $0x4] sm:$0xf] %vm148_vm2, %v147_v14 }
 0x10b   :  { %149 = vst.msk [vmem:[#allocation2] sm:$0xf] %vm148_vm2, %v146_v15 }
 0x111   :  { %v152_v16 = vld [vmem:[#allocation2 + $0x4] sm:$0xf] }
 0x112   :  { %v198_v17 = vsel %vm64_vm0, %v152_v16, 0  ;;  %v151_v18 = vld [vmem:[#allocation2] sm:$0xf]  ;;  %v314_v20 = vsel %vm268_vm3, %v152_v16, 0 }
 0x113   :  { %433 = vmatpush3.bf16.xpose.msra.mxu0 %v198_v17  ;;  %v155_v19 = vsel %vm64_vm0, %v151_v18, 0  ;;  %v269_v21 = vsel %vm268_vm3, %v151_v18, 0 }
 0x114   :  { %427 = vmatpush3.bf16.xpose.msra.mxu1 %v155_v19  ;;  %444 = vmatprep.subr.bf16.mxu0 %v574_v8 }
 0x115   :  { %438 = vmatprep.subr.bf16.mxu1 %v574_v8 }
 0x11a   :  { %435 = vmatmul.mubr.msk.bf16.vlgmr.msra.gmra.mrb[4].mxu0 %vm64_vm0, %v152_v16 }
 0x11b   :  { %429 = vmatmul.mubr.msk.bf16.vlgmr.msra.gmra.mrb[0].mxu1 %vm64_vm0, %v151_v18  ;;  %445 = vmatpush3.bf16.msra.mxu0 %v314_v20 }
 0x11c   :  { %439 = vmatpush3.bf16.msra.mxu1 %v269_v21  ;;  %440 = vmatprep.mubr.msk.bf16.mxu1 %vm575_vm1, %v574_v8 }
 0x11d   :  { %446 = vmatprep.mubr.msk.bf16.mxu0 %vm575_vm1, %v574_v8 }
 0x1ed   :  { %v234_v22 = vpop.f32.mrb[4].mxu0 }
 0x1ee   :  { %v191_v23 = vpop.f32.mrb[0].mxu1  ;;  %v436_v24 = vpop.f32.mrb[5].mxu0  ;;  %v244_v31 = vsel %vm240_vm4, %v234_v22, -inf }
 0x1ef   :  { %v430_v25 = vpop.f32.mrb[1].mxu1  ;;  %v237_v26 = vpop.f32.mrb[6].mxu0  ;;  %v241_v27 = vsel %vm240_vm4, %v191_v23, -inf }
 0x1f0   :  { %v437_v28 = vpop.f32.mrb[7].mxu0  ;;  %242 = vmax.xlane.f32.xlu0 %v241_v27  ;;  %v194_v29 = vpop.f32.mrb[2].mxu1 }
 0x1f1   :  { %v431_v30 = vpop.f32.mrb[3].mxu1 }
 0x1f4   :  { %245 = vmax.xlane.f32.xlu0 %v244_v31 }
 0x27d   :  { %v243_v32 = vpop.xlane.xlu0 %242 }
 0x27e   :  { %v247_v33 = vsub.f32 %v191_v23, %v243_v32 }
 0x280   :  { %v249_v34 = vmul.f32 1.442695, %v247_v33 }
 0x281   :  { %v246_v35 = vpop.xlane.xlu0 %245 }
 0x282   :  { %466 = vpow2.f32 %v249_v34  ;;  %v248_v36 = vsub.f32 %v234_v22, %v246_v35 }
 0x284   :  { %v251_v37 = vmul.f32 1.442695, %v248_v36 }
 0x286   :  { %468 = vpow2.f32 %v251_v37 }
 0x28c   :  { %v467_v38 = vpop.eup %466 }
 0x28d   :  { %v253_v39 = vsel %vm240_vm4, %v467_v38, 0.0 }
 0x28e   :  { %254 = vadd.xlane.f32.xlu1 %v253_v39 }
 0x290   :  { %v469_v40 = vpop.eup %468 }
 0x291   :  { %v256_v41 = vsel %vm240_vm4, %v469_v40, 0.0 }
 0x292   :  { %257 = vadd.xlane.f32.xlu1 %v256_v41 }
 0x31b   :  { %v255_v42 = vpop.xlane.xlu1 %254 }
 0x31c   :  { %470 = vrcp.f32 %v255_v42 }
 0x31f   :  { %v258_v43 = vpop.xlane.xlu1 %257 }
 0x320   :  { %472 = vrcp.f32 %v258_v43 }
 0x326   :  { %v471_v44 = vpop.eup %470 }
 0x327   :  { %v261_v45 = vmul.f32 %v471_v44, %v467_v38 }
 0x329   :  { %358 = vst.msk [vmem:[#allocation9] sm:$0xff] %vm240_vm4, %v261_v45  ;;  %v263_v46 = vpack.c.bf16 %v261_v45, %v261_v45 }
 0x32a   :  { %v473_v47 = vpop.eup %472 }
 0x32b   :  { %v262_v48 = vmul.f32 %v473_v47, %v469_v40  ;;  %441 = vmatmul.mubr.msk.bf16.vlgmr.msra.gmra.mrb[4].mxu1 %vm240_vm4, %v263_v46 }
 0x32d   :  { %359 = vst.msk [vmem:[#allocation9 + $0x8] sm:$0xff] %vm240_vm4, %v262_v48  ;;  %v264_v49 = vpack.c.bf16 %v262_v48, %v262_v48 }
 0x32f   :  { %447 = vmatmul.mubr.msk.bf16.vlgmr.msra.gmra.mrb[8].mxu0 %vm240_vm4, %v264_v49 }
 0x330   :  { %529 = shalt.err (!%p526_p6)
}
 0x331   :  { %s530_s19 = scalar_lea.hbm %s690_s4, 256 }
 0x332   :  { %p531_p7 = scmp.ne.s32.totalorder %s690_s4, %s530_s19  ;;  %p534_p8 = scmp.lt.u32.totalorder %s530_s19, %s690_s4 }
 0x334   :  { %p536_p9 = pnand %p534_p8, %p531_p7 }
 0x336   :  { %539 = shalt.err (!%p536_p9)
}
 0x337   :  { %383 = dma.vmem_to_hbm [thread:$0]  %s378_s15, 256, %s690_s4, [#allocation10], %s571_s25, %s571_s25, %s572_s26  }
 0x338   :  { %s577_s28 = smov [#allocation8]  }
 0x339   :  { %s365_s29 = sshll.u32 %s577_s28, 4  ;;  %s366_s29 = int_to_ptr.vmem [resolvable:$true] %s365_s29 }
 0x33a   :  { %s540_s30 = scalar_lea.vmem %s366_s29, 256  ;;  %p545_p11 = scmp.lt.s32.totalorder %s366_s29, %s366_s29 }
 0x33b   :  { %p541_p10 = scmp.ne.s32.totalorder %s366_s29, %s540_s30  ;;  %p546_p12 = scmp.lt.s32.totalorder %s540_s30, %s540_s30 }
 0x33d   :  { %p547_p13 = por %p546_p12, %p545_p11 }
 0x33f   :  { %p548_p0 = pnand %p547_p13, %p541_p10 }
 0x3fe   :  { %v305_v50 = vpop.f32.mrb[4].mxu1 }
 0x3ff   :  { %356 = vst.msk [vmem:[#allocation8] sm:$0xff] %vm64_vm0, %v305_v50  ;;  %v442_v51 = vpop.f32.mrb[5].mxu1 }
 0x400   :  { %v308_v52 = vpop.f32.mrb[6].mxu1 }
 0x401   :  { %v443_v53 = vpop.f32.mrb[7].mxu1 }
 0x402   :  { %v350_v54 = vpop.f32.mrb[8].mxu0 }
 0x403   :  { %357 = vst.msk [vmem:[#allocation8 + $0x8] sm:$0xff] %vm64_vm0, %v350_v54  ;;  %v448_v55 = vpop.f32.mrb[9].mxu0 }
 0x404   :  { %v353_v56 = vpop.f32.mrb[10].mxu0 }
 0x405   :  { %551 = shalt.err (!%p548_p0)
}
 0x406   :  { %s552_s6 = scalar_lea.hbm %s689_s3, 256 }
 0x407   :  { %p553_p1 = scmp.ne.s32.totalorder %s689_s3, %s552_s6  ;;  %p556_p2 = scmp.lt.u32.totalorder %s552_s6, %s689_s3 }
 0x409   :  { %p558_p3 = pnand %p556_p2, %p553_p1 }
 0x40b   :  { %561 = shalt.err (!%p558_p3)
}
 0x40c   :  { %371 = dma.vmem_to_hbm [thread:$0]  %s366_s29, 256, %s689_s3, [#allocation5], %s571_s25, %s571_s25, %s572_s26   ;;  %v449_v57 = vpop.f32.mrb[11].mxu0 }
 0x40d   :  { %566 = dma.done.wait [#allocation5], 256  }
 0x40e   :  { %567 = vsyncadd [#allocation5], 4294967040 }
 0x40f   :  { %568 = dma.done.wait [#allocation10], 256  }
 0x410   :  { %569 = vsyncadd [#allocation10], 4294967040 }
 0x411   :  { %390 = vsyncpa [#allocation4], 1 }
 0x412   :  { %391 = vsyncpa [#allocation7], 1 }
 0x413   :  { %392 = vsyncpa [#allocation5], 1 }
 0x414   :  { %393 = vsyncpa [#allocation10], 1 }

</bundles_post_ra>
